<compile_context>
chip_gen: v7x
topology: tpu7x:2x2x1
jax: 0.10.0
libtpu: 0.0.40
codegen_flags: <defaults>
</compile_context>

<pallas_src>
import math

import jax
import jax.numpy as jnp
from jax.experimental import pallas as pl
from jax.experimental.pallas import tpu as pltpu

_LANE_CHOICES = (512, 256, 128)   # lane-dense last-dim candidates (multiples of 128)
_TILE_ROWS = 1024                 # 1024x512 f32 = 2 MiB/tile
_MIN_PALLAS_ELEMENTS = 1 << 20    # below ~1M elems XLA's fused FMA is already at roofline


def _scalar_fma_kernel(w_ref, b_ref, x_ref, o_ref):
    # w_ref / b_ref: (1,) f32 scalars in SMEM. x_ref / o_ref: VMEM row tiles.
    w = w_ref[0]
    b = b_ref[0]
    o_ref[...] = (x_ref[...].astype(jnp.float32) * w + b).astype(o_ref.dtype)


def _pick_lanes(total):
    """Largest 128-multiple lane width that divides the flat extent (no padding)."""
    for lanes in _LANE_CHOICES:
        if total % lanes == 0:
            return lanes
    return None


def _pick_tile_rows(rows):
    if rows <= _TILE_ROWS:
        return rows                               # full-extent block: always legal
    for cand in (_TILE_ROWS, 512, 256, 128, 64, 32, 16, 8):
        if rows % cand == 0:
            return cand                           # divides rows -> no near-empty tail tile
    return _TILE_ROWS                             # rare: Pallas boundary-masks the tail


def _dimension_semantics(grid0):
    # v7x has 2 TensorCores per chip; CORE_PARALLEL shards the row axis across
    # both so both cores' DMA engines pull HBM concurrently. On 1-TC chips
    # (v5e/v6e) plain "parallel" is used (inert but safe).
    try:
        kind = jax.devices()[0].device_kind.lower()
    except Exception:
        kind = ""
    if "v7" in kind and grid0 % 2 == 0:
        return (pltpu.CORE_PARALLEL,)
    return ("parallel",)


def dynamic_model_forward(x, weight, bias, *, use_pallas=None):
    """Equivalent of DynamicModel.forward.

    x:      f32[N, 1, H, W] (NCHW) or None
    weight: f32[1, 1, 1, 1] (Conv2d(1, 1, 1) weight)
    bias:   f32[1]          (Conv2d(1, 1, 1) bias)
    """
    # The module's `if x is not None` branch is host-side control flow.
    if x is None:
        return None

    orig_shape = x.shape
    orig_dtype = x.dtype
    n, c, h, w = orig_shape
    assert c == 1, "DynamicModel uses Conv2d(1, 1, 1): single input channel"

    total = math.prod(orig_shape)
    w_scalar = weight.reshape(()).astype(jnp.float32)
    b_scalar = bias.reshape(()).astype(jnp.float32)

    lanes = _pick_lanes(total)
    if use_pallas is None:
        use_pallas = total >= _MIN_PALLAS_ELEMENTS
    if lanes is None or not use_pallas:
        # Ragged (would need pad/slice round-trip ~ 3x HBM traffic) or tiny:
        # the fused XLA elementwise FMA is already at the HBM roofline.
        return (x.astype(jnp.float32) * w_scalar + b_scalar).astype(orig_dtype)

    # Copy-free relabel of the contiguous NCHW buffer into a lane-dense slab.
    rows = total // lanes
    x2d = x.reshape(rows, lanes)
    tr = _pick_tile_rows(rows)
    grid = (pl.cdiv(rows, tr),)
    itemsize = jnp.dtype(orig_dtype).itemsize

    out2d = pl.pallas_call(
        _scalar_fma_kernel,
        out_shape=jax.ShapeDtypeStruct(x2d.shape, x2d.dtype),
        grid=grid,
        in_specs=[
            pl.BlockSpec(memory_space=pltpu.MemorySpace.SMEM),   # weight scalar
            pl.BlockSpec(memory_space=pltpu.MemorySpace.SMEM),   # bias scalar
            pl.BlockSpec((tr, lanes), lambda i: (i, 0)),         # input row tile
        ],
        out_specs=pl.BlockSpec((tr, lanes), lambda i: (i, 0)),
        compiler_params=pltpu.CompilerParams(
            dimension_semantics=_dimension_semantics(grid[0]),
        ),
        cost_estimate=pl.CostEstimate(
            flops=2 * total,
            transcendentals=0,
            bytes_accessed=2 * total * itemsize,
        ),
    )(w_scalar.reshape(1), b_scalar.reshape(1), x2d)

    return out2d.reshape(orig_shape).astype(orig_dtype)


if __name__ == "__main__":
    key = jax.random.PRNGKey(0)
    kx, kw, kb, kx2, kx3 = jax.random.split(key, 5)

    # Deterministic synthetic parameters for Conv2d(1, 1, 1).
    weight = jax.random.normal(kw, (1, 1, 1, 1), dtype=jnp.float32)
    bias = jax.random.normal(kb, (1,), dtype=jnp.float32)

    # Small shape consistent with Conv2d(1, 1, 1): batch=2, C=1, spatial=16.
    # total=512 -> (1, 512) slab, single tile; force the kernel path.
    x = jax.random.normal(kx, (2, 1, 16, 16), dtype=jnp.float32)
    y = jax.block_until_ready(dynamic_model_forward(x, weight, bias, use_pallas=True))
    ref = x * weight.reshape(()) + bias.reshape(())
    assert y.shape == x.shape
    assert jnp.allclose(y, ref, atol=1e-6), "mismatch vs reference (small shape)"

    # Multi-tile pipelined path: rows=2048, tr=1024 -> grid=(2,), no padding.
    x_big = jax.random.normal(kx2, (4, 1, 512, 512), dtype=jnp.float32)
    y_big = jax.block_until_ready(dynamic_model_forward(x_big, weight, bias))
    ref_big = x_big * weight.reshape(()) + bias.reshape(())
    assert y_big.shape == x_big.shape
    assert jnp.allclose(y_big, ref_big, atol=1e-6), "mismatch vs reference (tiled shape)"

    # Ragged shape -> XLA fallback (no pad/slice round-trip is ever emitted).
    x_rag = jax.random.normal(kx3, (2, 1, 7, 5), dtype=jnp.float32)
    y_rag = jax.block_until_ready(dynamic_model_forward(x_rag, weight, bias))
    ref_rag = x_rag * weight.reshape(()) + bias.reshape(())
    assert jnp.allclose(y_rag, ref_rag, atol=1e-6), "mismatch vs reference (ragged shape)"

    # The module's `if x is not None` branch.
    assert dynamic_model_forward(None, weight, bias) is None

    print("KERNEL_OK")
</pallas_src>

<mosaic_0001>
module attributes {stable_mosaic.version = 11 : i64} {
  func.func @_scalar_fma_kernel(%arg0: i32, %arg1: memref<1xf32, #tpu.memory_space<smem>>, %arg2: memref<1xf32, #tpu.memory_space<smem>>, %arg3: memref<1x512xf32, #tpu.memory_space<vmem>>, %arg4: memref<1x512xf32, #tpu.memory_space<vmem>>) attributes {dimension_semantics = [#tpu.dimension_semantics<parallel>], iteration_bounds = array<i64: 1>, scalar_prefetch = 0 : i64, scratch_operands = 0 : i64, tpu.core_type = #tpu.core_type<tc>, window_params = [{transform_indices = @transform_0, window_bounds = array<i64: 1>}, {transform_indices = @transform_1, window_bounds = array<i64: 1>}, {transform_indices = @transform_2, window_bounds = array<i64: 1, 512>}, {transform_indices = @transform_3, window_bounds = array<i64: 1, 512>}]} {
    %c0 = arith.constant 0 : index
    %0 = memref.load %arg1[%c0] : memref<1xf32, #tpu.memory_space<smem>>
    %c0_0 = arith.constant 0 : index
    %1 = memref.load %arg2[%c0_0] : memref<1xf32, #tpu.memory_space<smem>>
    %c0_1 = arith.constant 0 : index
    %c0_2 = arith.constant 0 : index
    %2 = vector.load %arg3[%c0_1, %c0_2] : memref<1x512xf32, #tpu.memory_space<vmem>>, vector<1x512xf32>
    %3 = vector.broadcast %0 : f32 to vector<1x512xf32>
    %4 = arith.mulf %2, %3 : vector<1x512xf32>
    %5 = vector.broadcast %1 : f32 to vector<1x512xf32>
    %6 = arith.addf %4, %5 : vector<1x512xf32>
    %c0_3 = arith.constant 0 : index
    %c0_4 = arith.constant 0 : index
    %7 = vector.load %arg4[%c0_3, %c0_4] : memref<1x512xf32, #tpu.memory_space<vmem>>, vector<1x512xf32>
    tpu.vector_store %arg4[%c0_3, %c0_4], %6 {strides = array<i32>} : memref<1x512xf32, #tpu.memory_space<vmem>>, vector<1x512xf32>,
    return
  }
  func.func @transform_0(%arg0: i32) -> i32 {
    %c0_i32 = arith.constant 0 : i32
    %c0_i32_0 = arith.constant 0 : i32
    return %c0_i32 : i32
  }
  func.func @transform_1(%arg0: i32) -> i32 {
    %c0_i32 = arith.constant 0 : i32
    %c0_i32_0 = arith.constant 0 : i32
    return %c0_i32 : i32
  }
  func.func @transform_2(%arg0: i32) -> (i32, i32) {
    %c0_i32 = arith.constant 0 : i32
    %c0_i32_0 = arith.constant 0 : i32
    return %arg0, %c0_i32 : i32, i32
  }
  func.func @transform_3(%arg0: i32) -> (i32, i32) {
    %c0_i32 = arith.constant 0 : i32
    %c0_i32_0 = arith.constant 0 : i32
    return %arg0, %c0_i32 : i32, i32
  }
}

</mosaic_0001>

<bundles_post_ra>
// kernel: tpu_custom_call.1
= control target key start
LH: loop header
LB: loop body
LE: loop exit
PB: predicated region body
PF: predicated region fallthrough
CT: control target
= control target key end

     0   :  { %v24_v3 = vlaneseq  ;;  %s110_s0 = inlined_call_operand.<no memory space> [shape: f32[1], index: 0, kind: input, shape index: {}]   ;;  %s111_s1 = inlined_call_operand.<no memory space> [shape: f32[1], index: 1, kind: input, shape index: {}]   ;;  %s112_s2 = inlined_call_operand.vmem [shape: f32[1,512], index: 2, kind: input, shape index: {}]   ;;  %s113_s3 = inlined_call_operand.hbm [shape: f32[1,512], index: 3, kind: output, shape index: {}]  }
   0x1   :  { %v19_v0 = vld [vmem:[%s112_s2] sm:$0xf]  ;;  %v20_v1 = vstv %s110_s0  ;;  %v22_v2 = vstv %s111_s1 }
   0x2   :  { %10 = vsyncpa [#allocation5], 0  ;;  %v21_v4 = vmul.f32 %v20_v1, %v19_v0  ;;  %s68_s18 = smov [#allocation4]   ;;  %vm26_vm0 = vcmp.lt.s32.totalorder %v24_v3, 512 }
   0x3   :  { %s35_s19 = sshll.u32 %s68_s18, 4  ;;  %s36_s19 = int_to_ptr.vmem [resolvable:$true] %s35_s19 }
   0x4   :  { %v23_v5 = vadd.f32 %v22_v2, %v21_v4  ;;  %s44_s20 = scalar_lea.vmem %s36_s19, 64  ;;  %p49_p1 = scmp.lt.s32.totalorder %s36_s19, %s36_s19 }
   0x5   :  { %p45_p0 = scmp.ne.s32.totalorder %s36_s19, %s44_s20  ;;  %p50_p2 = scmp.lt.s32.totalorder %s44_s20, %s44_s20 }
   0x6   :  { %28 = vst.msk [vmem:[#allocation4] sm:$0xf] %vm26_vm0, %v23_v5 }
   0x7   :  { %p51_p3 = por %p50_p2, %p49_p1 }
   0x9   :  { %p52_p4 = pnand %p51_p3, %p45_p0 }
   0xb   :  { %55 = shalt.err (!%p52_p4)
}
   0xc   :  { %s56_s1 = scalar_lea.hbm %s113_s3, 64 }
   0xd   :  { %p57_p5 = scmp.ne.s32.totalorder %s113_s3, %s56_s1  ;;  %p60_p6 = scmp.lt.u32.totalorder %s56_s1, %s113_s3 }
   0xf   :  { %p62_p7 = pnand %p60_p6, %p57_p5 }
  0x11   :  { %65 = shalt.err (!%p62_p7)
}
  0x12   :  { %38 = dma.vmem_to_hbm [thread:$0]  %s36_s19, 64, %s113_s3, [#allocation5]  }
  0x13   :  { %66 = dma.done.wait [#allocation5], 64  }
  0x14   :  { %67 = vsyncadd [#allocation5], 4294967232 }
  0x15   :  { %42 = vsyncpa [#allocation5], 1 }

</bundles_post_ra>
